<compile_context>
chip_gen: v7x
topology: tpu7x:2x2x1
jax: 0.10.0
libtpu: 0.0.40
codegen_flags: <defaults>
</compile_context>

<pallas_src>
import functools

import jax
import jax.numpy as jnp
from jax import lax
from jax.experimental import pallas as pl
from jax.experimental.pallas import tpu as pltpu


def _lstm_kernel(x_ref, w_ih_ref, w_hh_ref, b_ref, w_fc_ref, b_fc_ref, out_ref,
                 *, hidden_size, seq_len, batch):
    """Whole LSTM recurrence + final FC in one kernel invocation.

    x_ref:    (T*B, I)  time-major input, flattened over (T, B), VMEM
    w_ih_ref: (I, 4H)   input->gates weight (transposed; g columns pre-scaled x2)
    w_hh_ref: (H, 4H)   hidden->gates weight (transposed; g columns pre-scaled x2)
    b_ref:    (1, 4H)   combined bias b_ih + b_hh (g lanes pre-scaled x2)
    w_fc_ref: (H, Cp)   FC weight (transposed, lane-padded to a multiple of 128)
    b_fc_ref: (1, Cp)   FC bias (lane-padded)
    out_ref:  (B, Cp)   padded logits from the last timestep's hidden state
    """
    H, T, B = hidden_size, seq_len, batch

    # ---- Hoisted input projection: one big MXU matmul, bias folded in. ----
    # Gate order [i, f, g, o]; g lanes already carry 2*x_raw (see wrapper).
    x_proj = (jnp.dot(x_ref[...], w_ih_ref[...],
                      preferred_element_type=jnp.float32)
              + b_ref[...])

    w_hh = w_hh_ref[...]

    def gate_combine(gates, c_prev):
        # Single full-vreg sigmoid covers all four gates; tanh on the g lanes is
        # recovered via tanh(x) = 2*sigmoid(2x) - 1 (g lanes were pre-scaled by 2).
        sig = jax.nn.sigmoid(gates)                            # (B, 4H)
        i_g = sig[:, 0:H]
        g_g = 2.0 * sig[:, 2 * H:3 * H] - 1.0
        o_g = sig[:, 3 * H:4 * H]
        if c_prev is None:                                     # peeled t=0: c == 0
            c = i_g * g_g
        else:
            f_g = sig[:, H:2 * H]
            c = f_g * c_prev + i_g * g_g
        h = o_g * jnp.tanh(c)
        return h, c

    # ---- Peeled t=0: h = c = 0, so skip the hidden matmul and forget term. ----
    h, c = gate_combine(x_proj[0:B, :], None)

    # ---- Fully unrolled recurrence: one MXU push per step on the serial path. ----
    for t in range(1, T):
        gates = x_proj[t * B:(t + 1) * B, :] + jnp.dot(
            h, w_hh, preferred_element_type=jnp.float32)       # (B, 4H)
        h, c = gate_combine(gates, c)

    # ---- Final FC on last hidden state; Cp multiple of 128 -> dense lane store. ----
    out_ref[...] = (jnp.dot(h, w_fc_ref[...],
                            preferred_element_type=jnp.float32)
                    + b_fc_ref[...])


def prepare_params(w_ih, w_hh, b_ih, b_hh, w_fc, b_fc):
    """One-time (per model) preprocessing, hoisted out of the per-call path."""
    H = w_hh.shape[1]
    C = w_fc.shape[0]
    Cp = ((C + 127) // 128) * 128            # pad FC lane dim to a 128 multiple

    # Pre-scale the g-gate (cell candidate) columns by 2 so that a single in-kernel
    # sigmoid yields tanh on those lanes via tanh(x) = 2*sigmoid(2x) - 1.
    scale = jnp.concatenate([jnp.ones((2 * H,), jnp.float32),
                             jnp.full((H,), 2.0, jnp.float32),
                             jnp.ones((H,), jnp.float32)])     # [i, f, g, o]

    w_ih_t = jnp.transpose(w_ih).astype(jnp.float32) * scale[None, :]   # (I, 4H)
    w_hh_t = jnp.transpose(w_hh).astype(jnp.float32) * scale[None, :]   # (H, 4H)
    b = ((b_ih + b_hh).astype(jnp.float32) * scale).reshape(1, 4 * H)   # (1, 4H)

    w_fc_t = jnp.transpose(w_fc).astype(jnp.float32)                    # (H, C)
    w_fc_p = jnp.zeros((H, Cp), jnp.float32).at[:, :C].set(w_fc_t)
    b_fc_p = jnp.zeros((1, Cp), jnp.float32).at[:, :C].set(
        b_fc.reshape(1, C).astype(jnp.float32))

    return (w_ih_t, w_hh_t, b, w_fc_p, b_fc_p)


@functools.partial(jax.jit, static_argnames=("num_classes",))
def lstm_forward(x, w_ih_t, w_hh_t, b, w_fc_p, b_fc_p, *, num_classes):
    """x: (B, T, I) batch-first, like PyTorch nn.LSTM(batch_first=True).

    Weights must already be preprocessed by `prepare_params`."""
    B, T, I = x.shape
    H = w_hh_t.shape[0]
    Cp = w_fc_p.shape[1]

    # Keep batch rows sublane-aligned (multiple of 8); pad only if needed.
    Bp = ((B + 7) // 8) * 8
    x_tm = jnp.transpose(x, (1, 0, 2)).astype(jnp.float32)     # (T, B, I)
    if Bp != B:
        x_tm = jnp.pad(x_tm, ((0, 0), (0, Bp - B), (0, 0)))
    x_tm = x_tm.reshape(T * Bp, I)

    kernel = functools.partial(_lstm_kernel, hidden_size=H, seq_len=T, batch=Bp)

    cost = pl.CostEstimate(
        flops=int(2 * T * Bp * (I + H) * 4 * H + 2 * Bp * H * Cp),
        transcendentals=int(T * Bp * 5 * H),   # sigmoid over 4H + tanh(c) per step
        bytes_accessed=int(4 * (T * Bp * I + I * 4 * H + H * 4 * H + 4 * H
                                + H * Cp + Cp + Bp * Cp)),
    )

    vmem = pl.BlockSpec(memory_space=pltpu.MemorySpace.VMEM)
    out_p = pl.pallas_call(
        kernel,
        out_shape=jax.ShapeDtypeStruct((Bp, Cp), jnp.float32),
        in_specs=[vmem] * 6,
        out_specs=vmem,
        cost_estimate=cost,
    )(x_tm, w_ih_t, w_hh_t, b, w_fc_p, b_fc_p)
    return out_p[:B, :num_classes]


def lstm_reference(x, w_ih, w_hh, b_ih, b_hh, w_fc, b_fc):
    """Pure-JAX reference matching torch.nn.LSTM + Linear semantics."""
    B, T, I = x.shape
    H = w_hh.shape[1]

    def cell(carry, x_t):
        h, c = carry
        gates = x_t @ w_ih.T + b_ih + h @ w_hh.T + b_hh
        i_g = jax.nn.sigmoid(gates[:, 0:H])
        f_g = jax.nn.sigmoid(gates[:, H:2 * H])
        g_g = jnp.tanh(gates[:, 2 * H:3 * H])
        o_g = jax.nn.sigmoid(gates[:, 3 * H:4 * H])
        c_new = f_g * c + i_g * g_g
        h_new = o_g * jnp.tanh(c_new)
        return (h_new, c_new), h_new

    h0 = jnp.zeros((B, H), jnp.float32)
    c0 = jnp.zeros((B, H), jnp.float32)
    (h_last, _), _ = lax.scan(cell, (h0, c0), jnp.transpose(x, (1, 0, 2)))
    return h_last @ w_fc.T + b_fc


if __name__ == "__main__":
    # Small shapes consistent with the module's forward.
    batch, seq_len, input_size = 8, 8, 16
    hidden_size, num_classes = 32, 10

    key = jax.random.PRNGKey(0)
    ks = jax.random.split(key, 8)
    # PyTorch-style uniform(-1/sqrt(H), 1/sqrt(H)) init, deterministic.
    bound = 1.0 / jnp.sqrt(jnp.float32(hidden_size))

    x = jax.random.normal(ks[0], (batch, seq_len, input_size), jnp.float32)
    w_ih = jax.random.uniform(ks[1], (4 * hidden_size, input_size), jnp.float32, -bound, bound)
    w_hh = jax.random.uniform(ks[2], (4 * hidden_size, hidden_size), jnp.float32, -bound, bound)
    b_ih = jax.random.uniform(ks[3], (4 * hidden_size,), jnp.float32, -bound, bound)
    b_hh = jax.random.uniform(ks[4], (4 * hidden_size,), jnp.float32, -bound, bound)
    w_fc = jax.random.uniform(ks[5], (num_classes, hidden_size), jnp.float32, -bound, bound)
    b_fc = jax.random.uniform(ks[6], (num_classes,), jnp.float32, -bound, bound)

    # One-time preprocessing (hoisted off the per-call path).
    params = jax.block_until_ready(
        prepare_params(w_ih, w_hh, b_ih, b_hh, w_fc, b_fc))

    out = lstm_forward(x, *params, num_classes=num_classes)
    out = jax.block_until_ready(out)

    ref = lstm_reference(x, w_ih, w_hh, b_ih, b_hh, w_fc, b_fc)
    assert out.shape == (batch, num_classes)
    assert jnp.allclose(out, ref, atol=5e-5, rtol=1e-5), "mismatch vs reference"

    print("KERNEL_OK")
</pallas_src>

<mosaic_0001>
module attributes {stable_mosaic.version = 11 : i64} {
  func.func @_lstm_kernel(%arg0: memref<64x16xf32, #tpu.memory_space<vmem>>, %arg1: memref<16x128xf32, #tpu.memory_space<vmem>>, %arg2: memref<32x128xf32, #tpu.memory_space<vmem>>, %arg3: memref<1x128xf32, #tpu.memory_space<vmem>>, %arg4: memref<32x128xf32, #tpu.memory_space<vmem>>, %arg5: memref<1x128xf32, #tpu.memory_space<vmem>>, %arg6: memref<8x128xf32, #tpu.memory_space<vmem>>) attributes {dimension_semantics = [], scalar_prefetch = 0 : i64, scratch_operands = 0 : i64, tpu.core_type = #tpu.core_type<tc>} {
    %c0 = arith.constant 0 : index
    %c0_0 = arith.constant 0 : index
    %0 = vector.load %arg0[%c0, %c0_0] : memref<64x16xf32, #tpu.memory_space<vmem>>, vector<64x16xf32>
    %c0_1 = arith.constant 0 : index
    %c0_2 = arith.constant 0 : index
    %1 = vector.load %arg1[%c0_1, %c0_2] : memref<16x128xf32, #tpu.memory_space<vmem>>, vector<16x128xf32>
    %cst = arith.constant dense<0.000000e+00> : vector<64x128xf32>
    %2 = tpu.matmul %0, %1, %cst {dimension_numbers = #tpu.dot_dimension_numbers<[1], [0], [0], [1], [0, 0, 1, 1], [], []>} : vector<64x16xf32>, vector<16x128xf32>, vector<64x128xf32> -> vector<64x128xf32>
    %c0_3 = arith.constant 0 : index
    %c0_4 = arith.constant 0 : index
    %3 = vector.load %arg3[%c0_3, %c0_4] : memref<1x128xf32, #tpu.memory_space<vmem>>, vector<1x128xf32>
    %4 = vector.broadcast %3 : vector<1x128xf32> to vector<64x128xf32>
    %5 = arith.addf %2, %4 : vector<64x128xf32>
    %c0_5 = arith.constant 0 : index
    %c0_6 = arith.constant 0 : index
    %6 = vector.load %arg2[%c0_5, %c0_6] : memref<32x128xf32, #tpu.memory_space<vmem>>, vector<32x128xf32>
    %7 = vector.extract_strided_slice %5 {offsets = [0, 0], sizes = [8, 128], strides = [1, 1]} : vector<64x128xf32> to vector<8x128xf32>
    %8 = arith.negf %7 : vector<8x128xf32>
    %9 = math.exp %8 : vector<8x128xf32>
    %cst_7 = arith.constant 1.000000e+00 : f32
    %10 = vector.broadcast %cst_7 : f32 to vector<8x128xf32>
    %11 = arith.addf %10, %9 : vector<8x128xf32>
    %12 = arith.divf %10, %11 : vector<8x128xf32>
    %13 = vector.extract_strided_slice %12 {offsets = [0, 0], sizes = [8, 32], strides = [1, 1]} : vector<8x128xf32> to vector<8x32xf32>
    %14 = vector.extract_strided_slice %12 {offsets = [0, 64], sizes = [8, 32], strides = [1, 1]} : vector<8x128xf32> to vector<8x32xf32>
    %cst_8 = arith.constant 2.000000e+00 : f32
    %15 = vector.broadcast %cst_8 : f32 to vector<8x32xf32>
    %16 = arith.mulf %15, %14 : vector<8x32xf32>
    %cst_9 = arith.constant 1.000000e+00 : f32
    %17 = vector.broadcast %cst_9 : f32 to vector<8x32xf32>
    %18 = arith.subf %16, %17 : vector<8x32xf32>
    %19 = vector.extract_strided_slice %12 {offsets = [0, 96], sizes = [8, 32], strides = [1, 1]} : vector<8x128xf32> to vector<8x32xf32>
    %20 = arith.mulf %13, %18 : vector<8x32xf32>
    %21 = math.tanh %20 : vector<8x32xf32>
    %22 = arith.mulf %19, %21 : vector<8x32xf32>
    %23 = vector.extract_strided_slice %5 {offsets = [8, 0], sizes = [8, 128], strides = [1, 1]} : vector<64x128xf32> to vector<8x128xf32>
    %cst_10 = arith.constant dense<0.000000e+00> : vector<8x128xf32>
    %24 = tpu.matmul %22, %6, %cst_10 {dimension_numbers = #tpu.dot_dimension_numbers<[1], [0], [0], [1], [0, 0, 1, 1], [], []>} : vector<8x32xf32>, vector<32x128xf32>, vector<8x128xf32> -> vector<8x128xf32>
    %25 = arith.addf %23, %24 : vector<8x128xf32>
    %26 = arith.negf %25 : vector<8x128xf32>
    %27 = math.exp %26 : vector<8x128xf32>
    %cst_11 = arith.constant 1.000000e+00 : f32
    %28 = vector.broadcast %cst_11 : f32 to vector<8x128xf32>
    %29 = arith.addf %28, %27 : vector<8x128xf32>
    %30 = arith.divf %28, %29 : vector<8x128xf32>
    %31 = vector.extract_strided_slice %30 {offsets = [0, 0], sizes = [8, 32], strides = [1, 1]} : vector<8x128xf32> to vector<8x32xf32>
    %32 = vector.extract_strided_slice %30 {offsets = [0, 64], sizes = [8, 32], strides = [1, 1]} : vector<8x128xf32> to vector<8x32xf32>
    %cst_12 = arith.constant 2.000000e+00 : f32
    %33 = vector.broadcast %cst_12 : f32 to vector<8x32xf32>
    %34 = arith.mulf %33, %32 : vector<8x32xf32>
    %cst_13 = arith.constant 1.000000e+00 : f32
    %35 = vector.broadcast %cst_13 : f32 to vector<8x32xf32>
    %36 = arith.subf %34, %35 : vector<8x32xf32>
    %37 = vector.extract_strided_slice %30 {offsets = [0, 96], sizes = [8, 32], strides = [1, 1]} : vector<8x128xf32> to vector<8x32xf32>
    %38 = vector.extract_strided_slice %30 {offsets = [0, 32], sizes = [8, 32], strides = [1, 1]} : vector<8x128xf32> to vector<8x32xf32>
    %39 = arith.mulf %38, %20 : vector<8x32xf32>
    %40 = arith.mulf %31, %36 : vector<8x32xf32>
    %41 = arith.addf %39, %40 : vector<8x32xf32>
    %42 = math.tanh %41 : vector<8x32xf32>
    %43 = arith.mulf %37, %42 : vector<8x32xf32>
    %44 = vector.extract_strided_slice %5 {offsets = [16, 0], sizes = [8, 128], strides = [1, 1]} : vector<64x128xf32> to vector<8x128xf32>
    %cst_14 = arith.constant dense<0.000000e+00> : vector<8x128xf32>
    %45 = tpu.matmul %43, %6, %cst_14 {dimension_numbers = #tpu.dot_dimension_numbers<[1], [0], [0], [1], [0, 0, 1, 1], [], []>} : vector<8x32xf32>, vector<32x128xf32>, vector<8x128xf32> -> vector<8x128xf32>
    %46 = arith.addf %44, %45 : vector<8x128xf32>
    %47 = arith.negf %46 : vector<8x128xf32>
    %48 = math.exp %47 : vector<8x128xf32>
    %cst_15 = arith.constant 1.000000e+00 : f32
    %49 = vector.broadcast %cst_15 : f32 to vector<8x128xf32>
    %50 = arith.addf %49, %48 : vector<8x128xf32>
    %51 = arith.divf %49, %50 : vector<8x128xf32>
    %52 = vector.extract_strided_slice %51 {offsets = [0, 0], sizes = [8, 32], strides = [1, 1]} : vector<8x128xf32> to vector<8x32xf32>
    %53 = vector.extract_strided_slice %51 {offsets = [0, 64], sizes = [8, 32], strides = [1, 1]} : vector<8x128xf32> to vector<8x32xf32>
    %cst_16 = arith.constant 2.000000e+00 : f32
    %54 = vector.broadcast %cst_16 : f32 to vector<8x32xf32>
    %55 = arith.mulf %54, %53 : vector<8x32xf32>
    %cst_17 = arith.constant 1.000000e+00 : f32
    %56 = vector.broadcast %cst_17 : f32 to vector<8x32xf32>
    %57 = arith.subf %55, %56 : vector<8x32xf32>
    %58 = vector.extract_strided_slice %51 {offsets = [0, 96], sizes = [8, 32], strides = [1, 1]} : vector<8x128xf32> to vector<8x32xf32>
    %59 = vector.extract_strided_slice %51 {offsets = [0, 32], sizes = [8, 32], strides = [1, 1]} : vector<8x128xf32> to vector<8x32xf32>
    %60 = arith.mulf %59, %41 : vector<8x32xf32>
    %61 = arith.mulf %52, %57 : vector<8x32xf32>
    %62 = arith.addf %60, %61 : vector<8x32xf32>
    %63 = math.tanh %62 : vector<8x32xf32>
    %64 = arith.mulf %58, %63 : vector<8x32xf32>
    %65 = vector.extract_strided_slice %5 {offsets = [24, 0], sizes = [8, 128], strides = [1, 1]} : vector<64x128xf32> to vector<8x128xf32>
    %cst_18 = arith.constant dense<0.000000e+00> : vector<8x128xf32>
    %66 = tpu.matmul %64, %6, %cst_18 {dimension_numbers = #tpu.dot_dimension_numbers<[1], [0], [0], [1], [0, 0, 1, 1], [], []>} : vector<8x32xf32>, vector<32x128xf32>, vector<8x128xf32> -> vector<8x128xf32>
    %67 = arith.addf %65, %66 : vector<8x128xf32>
    %68 = arith.negf %67 : vector<8x128xf32>
    %69 = math.exp %68 : vector<8x128xf32>
    %cst_19 = arith.constant 1.000000e+00 : f32
    %70 = vector.broadcast %cst_19 : f32 to vector<8x128xf32>
    %71 = arith.addf %70, %69 : vector<8x128xf32>
    %72 = arith.divf %70, %71 : vector<8x128xf32>
    %73 = vector.extract_strided_slice %72 {offsets = [0, 0], sizes = [8, 32], strides = [1, 1]} : vector<8x128xf32> to vector<8x32xf32>
    %74 = vector.extract_strided_slice %72 {offsets = [0, 64], sizes = [8, 32], strides = [1, 1]} : vector<8x128xf32> to vector<8x32xf32>
    %cst_20 = arith.constant 2.000000e+00 : f32
    %75 = vector.broadcast %cst_20 : f32 to vector<8x32xf32>
    %76 = arith.mulf %75, %74 : vector<8x32xf32>
    %cst_21 = arith.constant 1.000000e+00 : f32
    %77 = vector.broadcast %cst_21 : f32 to vector<8x32xf32>
    %78 = arith.subf %76, %77 : vector<8x32xf32>
    %79 = vector.extract_strided_slice %72 {offsets = [0, 96], sizes = [8, 32], strides = [1, 1]} : vector<8x128xf32> to vector<8x32xf32>
    %80 = vector.extract_strided_slice %72 {offsets = [0, 32], sizes = [8, 32], strides = [1, 1]} : vector<8x128xf32> to vector<8x32xf32>
    %81 = arith.mulf %80, %62 : vector<8x32xf32>
    %82 = arith.mulf %73, %78 : vector<8x32xf32>
    %83 = arith.addf %81, %82 : vector<8x32xf32>
    %84 = math.tanh %83 : vector<8x32xf32>
    %85 = arith.mulf %79, %84 : vector<8x32xf32>
    %86 = vector.extract_strided_slice %5 {offsets = [32, 0], sizes = [8, 128], strides = [1, 1]} : vector<64x128xf32> to vector<8x128xf32>
    %cst_22 = arith.constant dense<0.000000e+00> : vector<8x128xf32>
    %87 = tpu.matmul %85, %6, %cst_22 {dimension_numbers = #tpu.dot_dimension_numbers<[1], [0], [0], [1], [0, 0, 1, 1], [], []>} : vector<8x32xf32>, vector<32x128xf32>, vector<8x128xf32> -> vector<8x128xf32>
    %88 = arith.addf %86, %87 : vector<8x128xf32>
    %89 = arith.negf %88 : vector<8x128xf32>
    %90 = math.exp %89 : vector<8x128xf32>
    %cst_23 = arith.constant 1.000000e+00 : f32
    %91 = vector.broadcast %cst_23 : f32 to vector<8x128xf32>
    %92 = arith.addf %91, %90 : vector<8x128xf32>
    %93 = arith.divf %91, %92 : vector<8x128xf32>
    %94 = vector.extract_strided_slice %93 {offsets = [0, 0], sizes = [8, 32], strides = [1, 1]} : vector<8x128xf32> to vector<8x32xf32>
    %95 = vector.extract_strided_slice %93 {offsets = [0, 64], sizes = [8, 32], strides = [1, 1]} : vector<8x128xf32> to vector<8x32xf32>
    %cst_24 = arith.constant 2.000000e+00 : f32
    %96 = vector.broadcast %cst_24 : f32 to vector<8x32xf32>
    %97 = arith.mulf %96, %95 : vector<8x32xf32>
    %cst_25 = arith.constant 1.000000e+00 : f32
    %98 = vector.broadcast %cst_25 : f32 to vector<8x32xf32>
    %99 = arith.subf %97, %98 : vector<8x32xf32>
    %100 = vector.extract_strided_slice %93 {offsets = [0, 96], sizes = [8, 32], strides = [1, 1]} : vector<8x128xf32> to vector<8x32xf32>
    %101 = vector.extract_strided_slice %93 {offsets = [0, 32], sizes = [8, 32], strides = [1, 1]} : vector<8x128xf32> to vector<8x32xf32>
    %102 = arith.mulf %101, %83 : vector<8x32xf32>
    %103 = arith.mulf %94, %99 : vector<8x32xf32>
    %104 = arith.addf %102, %103 : vector<8x32xf32>
    %105 = math.tanh %104 : vector<8x32xf32>
    %106 = arith.mulf %100, %105 : vector<8x32xf32>
    %107 = vector.extract_strided_slice %5 {offsets = [40, 0], sizes = [8, 128], strides = [1, 1]} : vector<64x128xf32> to vector<8x128xf32>
    %cst_26 = arith.constant dense<0.000000e+00> : vector<8x128xf32>
    %108 = tpu.matmul %106, %6, %cst_26 {dimension_numbers = #tpu.dot_dimension_numbers<[1], [0], [0], [1], [0, 0, 1, 1], [], []>} : vector<8x32xf32>, vector<32x128xf32>, vector<8x128xf32> -> vector<8x128xf32>
    %109 = arith.addf %107, %108 : vector<8x128xf32>
    %110 = arith.negf %109 : vector<8x128xf32>
    %111 = math.exp %110 : vector<8x128xf32>
    %cst_27 = arith.constant 1.000000e+00 : f32
    %112 = vector.broadcast %cst_27 : f32 to vector<8x128xf32>
    %113 = arith.addf %112, %111 : vector<8x128xf32>
    %114 = arith.divf %112, %113 : vector<8x128xf32>
    %115 = vector.extract_strided_slice %114 {offsets = [0, 0], sizes = [8, 32], strides = [1, 1]} : vector<8x128xf32> to vector<8x32xf32>
    %116 = vector.extract_strided_slice %114 {offsets = [0, 64], sizes = [8, 32], strides = [1, 1]} : vector<8x128xf32> to vector<8x32xf32>
    %cst_28 = arith.constant 2.000000e+00 : f32
    %117 = vector.broadcast %cst_28 : f32 to vector<8x32xf32>
    %118 = arith.mulf %117, %116 : vector<8x32xf32>
    %cst_29 = arith.constant 1.000000e+00 : f32
    %119 = vector.broadcast %cst_29 : f32 to vector<8x32xf32>
    %120 = arith.subf %118, %119 : vector<8x32xf32>
    %121 = vector.extract_strided_slice %114 {offsets = [0, 96], sizes = [8, 32], strides = [1, 1]} : vector<8x128xf32> to vector<8x32xf32>
    %122 = vector.extract_strided_slice %114 {offsets = [0, 32], sizes = [8, 32], strides = [1, 1]} : vector<8x128xf32> to vector<8x32xf32>
    %123 = arith.mulf %122, %104 : vector<8x32xf32>
    %124 = arith.mulf %115, %120 : vector<8x32xf32>
    %125 = arith.addf %123, %124 : vector<8x32xf32>
    %126 = math.tanh %125 : vector<8x32xf32>
    %127 = arith.mulf %121, %126 : vector<8x32xf32>
    %128 = vector.extract_strided_slice %5 {offsets = [48, 0], sizes = [8, 128], strides = [1, 1]} : vector<64x128xf32> to vector<8x128xf32>
    %cst_30 = arith.constant dense<0.000000e+00> : vector<8x128xf32>
    %129 = tpu.matmul %127, %6, %cst_30 {dimension_numbers = #tpu.dot_dimension_numbers<[1], [0], [0], [1], [0, 0, 1, 1], [], []>} : vector<8x32xf32>, vector<32x128xf32>, vector<8x128xf32> -> vector<8x128xf32>
    %130 = arith.addf %128, %129 : vector<8x128xf32>
    %131 = arith.negf %130 : vector<8x128xf32>
    %132 = math.exp %131 : vector<8x128xf32>
    %cst_31 = arith.constant 1.000000e+00 : f32
    %133 = vector.broadcast %cst_31 : f32 to vector<8x128xf32>
    %134 = arith.addf %133, %132 : vector<8x128xf32>
    %135 = arith.divf %133, %134 : vector<8x128xf32>
    %136 = vector.extract_strided_slice %135 {offsets = [0, 0], sizes = [8, 32], strides = [1, 1]} : vector<8x128xf32> to vector<8x32xf32>
    %137 = vector.extract_strided_slice %135 {offsets = [0, 64], sizes = [8, 32], strides = [1, 1]} : vector<8x128xf32> to vector<8x32xf32>
    %cst_32 = arith.constant 2.000000e+00 : f32
    %138 = vector.broadcast %cst_32 : f32 to vector<8x32xf32>
    %139 = arith.mulf %138, %137 : vector<8x32xf32>
    %cst_33 = arith.constant 1.000000e+00 : f32
    %140 = vector.broadcast %cst_33 : f32 to vector<8x32xf32>
    %141 = arith.subf %139, %140 : vector<8x32xf32>
    %142 = vector.extract_strided_slice %135 {offsets = [0, 96], sizes = [8, 32], strides = [1, 1]} : vector<8x128xf32> to vector<8x32xf32>
    %143 = vector.extract_strided_slice %135 {offsets = [0, 32], sizes = [8, 32], strides = [1, 1]} : vector<8x128xf32> to vector<8x32xf32>
    %144 = arith.mulf %143, %125 : vector<8x32xf32>
    %145 = arith.mulf %136, %141 : vector<8x32xf32>
    %146 = arith.addf %144, %145 : vector<8x32xf32>
    %147 = math.tanh %146 : vector<8x32xf32>
    %148 = arith.mulf %142, %147 : vector<8x32xf32>
    %149 = vector.extract_strided_slice %5 {offsets = [56, 0], sizes = [8, 128], strides = [1, 1]} : vector<64x128xf32> to vector<8x128xf32>
    %cst_34 = arith.constant dense<0.000000e+00> : vector<8x128xf32>
    %150 = tpu.matmul %148, %6, %cst_34 {dimension_numbers = #tpu.dot_dimension_numbers<[1], [0], [0], [1], [0, 0, 1, 1], [], []>} : vector<8x32xf32>, vector<32x128xf32>, vector<8x128xf32> -> vector<8x128xf32>
    %151 = arith.addf %149, %150 : vector<8x128xf32>
    %152 = arith.negf %151 : vector<8x128xf32>
    %153 = math.exp %152 : vector<8x128xf32>
    %cst_35 = arith.constant 1.000000e+00 : f32
    %154 = vector.broadcast %cst_35 : f32 to vector<8x128xf32>
    %155 = arith.addf %154, %153 : vector<8x128xf32>
    %156 = arith.divf %154, %155 : vector<8x128xf32>
    %157 = vector.extract_strided_slice %156 {offsets = [0, 0], sizes = [8, 32], strides = [1, 1]} : vector<8x128xf32> to vector<8x32xf32>
    %158 = vector.extract_strided_slice %156 {offsets = [0, 64], sizes = [8, 32], strides = [1, 1]} : vector<8x128xf32> to vector<8x32xf32>
    %cst_36 = arith.constant 2.000000e+00 : f32
    %159 = vector.broadcast %cst_36 : f32 to vector<8x32xf32>
    %160 = arith.mulf %159, %158 : vector<8x32xf32>
    %cst_37 = arith.constant 1.000000e+00 : f32
    %161 = vector.broadcast %cst_37 : f32 to vector<8x32xf32>
    %162 = arith.subf %160, %161 : vector<8x32xf32>
    %163 = vector.extract_strided_slice %156 {offsets = [0, 96], sizes = [8, 32], strides = [1, 1]} : vector<8x128xf32> to vector<8x32xf32>
    %164 = vector.extract_strided_slice %156 {offsets = [0, 32], sizes = [8, 32], strides = [1, 1]} : vector<8x128xf32> to vector<8x32xf32>
    %165 = arith.mulf %164, %146 : vector<8x32xf32>
    %166 = arith.mulf %157, %162 : vector<8x32xf32>
    %167 = arith.addf %165, %166 : vector<8x32xf32>
    %168 = math.tanh %167 : vector<8x32xf32>
    %169 = arith.mulf %163, %168 : vector<8x32xf32>
    %c0_38 = arith.constant 0 : index
    %c0_39 = arith.constant 0 : index
    %170 = vector.load %arg4[%c0_38, %c0_39] : memref<32x128xf32, #tpu.memory_space<vmem>>, vector<32x128xf32>
    %cst_40 = arith.constant dense<0.000000e+00> : vector<8x128xf32>
    %171 = tpu.matmul %169, %170, %cst_40 {dimension_numbers = #tpu.dot_dimension_numbers<[1], [0], [0], [1], [0, 0, 1, 1], [], []>} : vector<8x32xf32>, vector<32x128xf32>, vector<8x128xf32> -> vector<8x128xf32>
    %c0_41 = arith.constant 0 : index
    %c0_42 = arith.constant 0 : index
    %172 = vector.load %arg5[%c0_41, %c0_42] : memref<1x128xf32, #tpu.memory_space<vmem>>, vector<1x128xf32>
    %173 = vector.broadcast %172 : vector<1x128xf32> to vector<8x128xf32>
    %174 = arith.addf %171, %173 : vector<8x128xf32>
    %c0_43 = arith.constant 0 : index
    %c0_44 = arith.constant 0 : index
    %175 = vector.load %arg6[%c0_43, %c0_44] : memref<8x128xf32, #tpu.memory_space<vmem>>, vector<8x128xf32>
    tpu.vector_store %arg6[%c0_43, %c0_44], %174 {strides = array<i32>} : memref<8x128xf32, #tpu.memory_space<vmem>>, vector<8x128xf32>,
    return
  }
}

</mosaic_0001>

<bundles_post_ra>
// kernel: lstm_forward.1
= control target key start
LH: loop header
LB: loop body
LE: loop exit
PB: predicated region body
PF: predicated region fallthrough
CT: control target
= control target key end

     0   :  { %vm41_vm0 = vcmask 130048   ;;  %s1556_s0 = inlined_call_operand.vmem [shape: f32[64,16], index: 0, kind: input, shape index: {}]   ;;  %s1557_s1 = inlined_call_operand.vmem [shape: f32[16,128], index: 1, kind: input, shape index: {}]   ;;  %s1558_s2 = inlined_call_operand.vmem [shape: f32[32,128], index: 2, kind: input, shape index: {}]   ;;  %s1559_s3 = inlined_call_operand.vmem [shape: f32[1,128], index: 3, kind: input, shape index: {}]   ;;  %s1560_s4 = inlined_call_operand.vmem [shape: f32[32,128], index: 4, kind: input, shape index: {}]   ;;  %s1561_s5 = inlined_call_operand.vmem [shape: f32[1,128], index: 5, kind: input, shape index: {}]   ;;  %s1562_s6 = inlined_call_operand.hbm [shape: f32[8,128], index: 6, kind: output, shape index: {}]  }
   0x1   :  { %v32_v0 = vld [vmem:[%s1557_s1] sm:$0xff]  ;;  %v33_v1 = vld [vmem:[%s1557_s1 + $0x8] sm:$0xff] }
   0x2   :  { %v24_v2 = vld [vmem:[%s1556_s0] sm:$0xff]  ;;  %v1195_v3 = vpack.c.bf16 %v33_v1, %v32_v0 }
   0x3   :  { %1095 = vmatprep.mubr.msk.f32.mxu0 %vm41_vm0, %v24_v2 }
   0x4   :  { %11 = vsyncpa [#allocation3], 0  ;;  %1196 = vmatprep.subr.bf16.mxu0 %v1195_v3  ;;  %v25_v4 = vld [vmem:[%s1556_s0 + $0x8] sm:$0xff]  ;;  %v1385_v5 = vld [vmem:[%s1559_s3] ss:$0 sm:$0xff]  ;;  %s1326_s1 = smov 64  }
   0x5   :  { %1198 = vmatpush3.bf16.msra.mxu0 %v1195_v3  ;;  %v171_v17 = vld [vmem:[%s1558_s2] sm:$0xff]  ;;  %v172_v18 = vld [vmem:[%s1558_s2 + $0x8] sm:$0xff]  ;;  %v173_v19 = vld [vmem:[%s1558_s2 + $0x10] sm:$0xff]  ;;  %v1327_v20 = vmov 0.0|0.0   ;;  %vm1328_vm1 = vmmov 0   ;;  %v1329_v23 = vmov 0.0  }
   0x6   :  { %1199 = vmatprep.subr.bf16.mxu1 %v1327_v20  ;;  %v1399_v21 = vpack.c.bf16 %v172_v18, %v171_v17  ;;  %v174_v22 = vld [vmem:[%s1558_s2 + $0x18] sm:$0xff]  ;;  %1115 = vmatprep.mubr.msk.f32.mxu1 %vm1328_vm1, %v1329_v23  ;;  %s1330_s2 = smov 96   ;;  %s1331_s14 = smov 32   ;;  %vm197_vm2 = vcmask 261120   ;;  %v26_v45 = vld [vmem:[%s1556_s0 + $0x10] sm:$0xff] }
   0x7   :  { %1211 = vmatprep.subr.bf16.mxu0 %v1327_v20  ;;  %v1408_v24 = vpack.c.bf16 %v174_v22, %v173_v19  ;;  %v27_v46 = vld [vmem:[%s1556_s0 + $0x18] sm:$0xff] }
   0x8   :  { %1096 = vmatmul.mubr.msk.f32.vlgmr.msra.gmra.mrb[0].mxu0 %vm41_vm0, %v25_v4  ;;  %1201 = vmatpush3.bf16.msra.mxu1 %v1399_v21  ;;  %v28_v4 = vld [vmem:[%s1556_s0 + $0x20] sm:$0xff] }
   0x9   :  { %1213 = vmatpush3.bf16.msra.mxu0 %v1399_v21  ;;  %1202 = vmatprep.subr.bf16.mxu1 %v1327_v20 }
   0xa   :  { %1214 = vmatprep.subr.bf16.mxu0 %v1327_v20  ;;  %1098 = vmatprep.mubr.msk.f32.mxu0 %vm41_vm0, %v26_v45 }
   0xc   :  { %1204 = vmatpush3.bf16.msra.mxu1 %v1408_v24  ;;  %1099 = vmatmul.mubr.msk.f32.gmra.mrb[2].mxu0 %vm41_vm0, %v27_v46 }
   0xd   :  { %1216 = vmatpush3.bf16.msra.mxu0 %v1408_v24  ;;  %1205 = vmatprep.subr.bf16.mxu1 %v1327_v20 }
   0xe   :  { %1223 = vmatprep.subr.bf16.mxu0 %v1327_v20  ;;  %1101 = vmatprep.mubr.msk.f32.mxu0 %vm41_vm0, %v28_v4 }
  0xdb   :  { %v1097_v6 = vpop.f32.mrb[0].mxu0 }
  0xdc   :  { %v132_v7 = vpop.f32.mrb[1].mxu0  ;;  %v138_v29 = vadd.f32 %v1097_v6, %v1385_v5  ;;  %v29_v6 = vld [vmem:[%s1556_s0 + $0x28] sm:$0xff] }
  0xdd   :  { %v133_v8 = vadd.f32 %v1385_v5, %v132_v7  ;;  %v30_v7 = vld [vmem:[%s1556_s0 + $0x30] sm:$0xff]  ;;  %1102 = vmatmul.mubr.msk.f32.gmra.mrb[4].mxu0 %vm41_vm0, %v29_v6 }
  0xde   :  { %1104 = vmatprep.mubr.msk.f32.mxu0 %vm41_vm0, %v30_v7 }
  0xdf   :  { %v1016_v9 = vmul.f32 -1.442695, %v133_v8  ;;  %v1100_v50 = vpop.f32.mrb[2].mxu0  ;;  %v31_v8 = vld [vmem:[%s1556_s0 + $0x38] sm:$0xff] }
  0xe0   :  { %v142_v51 = vpop.f32.mrb[3].mxu0  ;;  %v148_v17 = vadd.f32 %v1100_v50, %v1385_v5 }
  0xe1   :  { %1254 = vpow2.f32 %v1016_v9  ;;  %v143_v53 = vadd.f32 %v1385_v5, %v142_v51  ;;  %1105 = vmatmul.mubr.msk.f32.gmra.mrb[6].mxu0 %vm41_vm0, %v31_v8 }
  0xe2   :  { %1137 = vmatprep.mubr.msk.f32.mxu0 %vm1328_vm1, %v1329_v23 }
  0xeb   :  { %v1255_v10 = vpop.eup %1254 }
  0xec   :  { %v178_v11 = vadd.f32 1.0, %v1255_v10 }
  0xee   :  { %1256 = vrcp.f32 %v178_v11 }
  0xf8   :  { %v1257_v12 = vpop.eup %1256 }
  0xf9   :  { %v181_v13 = vmul.f32 2.0, %v1257_v12 }
  0xfb   :  { %v1017_v14 = vadd.f32 -1.0, %v181_v13 }
  0xfd   :  { %184 = vrot.lane.b32.xlu0 %v1017_v14, %s1326_s1 }
 0x16f   :  { %v185_v15 = vpop.permute.xlu0 %184 }
 0x170   :  { %v187_v16 = vmul.f32 %v1257_v12, %v185_v15 }
 0x172   :  { %1258 = vtanh.f32 %v187_v16 }
 0x17c   :  { %v1259_v25 = vpop.eup %1258 }
 0x17d   :  { %190 = vrot.lane.b32.xlu0 %v1259_v25, %s1330_s2 }
 0x181   :  { %280 = vrot.lane.b32.xlu0 %v187_v16, %s1331_s14 }
 0x1ef   :  { %v191_v26 = vpop.permute.xlu0 %190 }
 0x1f0   :  { %v193_v27 = vmul.f32 %v1257_v12, %v191_v26  ;;  %v1469_v12 = vpop.f32.mrb[4].mxu0 }
 0x1f1   :  { %v152_v13 = vpop.f32.mrb[5].mxu0 }
 0x1f2   :  { %195 = vrot.lane.b32.xlu1 %v193_v27, %s1331_s14  ;;  %v1471_v14 = vpop.f32.mrb[6].mxu0 }
 0x1f3   :  { %v281_v41 = vpop.permute.xlu0 %280  ;;  %v1473_v15 = vpop.f32.mrb[7].mxu0 }
 0x264   :  { %v196_v28 = vpop.permute.xlu1 %195 }
 0x265   :  { %1116 = vmatmul.mubr.msk.f32.vlgmr.msra.gmra.mrb[0].mxu1 %vm197_vm2, %v196_v28 }
 0x266   :  { %1207 = vmatpush3.bf16.msra.mxu1 %v1399_v21  ;;  %1126 = vmatprep.mubr.msk.f32.mxu1 %vm1328_vm1, %v1329_v23 }
 0x267   :  { %1208 = vmatprep.subr.bf16.mxu1 %v1327_v20 }
 0x26a   :  { %1210 = vmatpush3.bf16.msra.mxu1 %v1408_v24 }
 0x26b   :  { %1217 = vmatprep.subr.bf16.mxu1 %v1327_v20 }
 0x338   :  { %v266_v30 = vpop.f32.mrb[0].mxu1 }
 0x339   :  { %v270_v31 = vadd.f32 %v266_v30, %v138_v29  ;;  %v1117_v32 = vpop.f32.mrb[1].mxu1 }
 0x33b   :  { %v1019_v33 = vmul.f32 -1.442695, %v270_v31 }
 0x33d   :  { %1260 = vpow2.f32 %v1019_v33 }
 0x347   :  { %v1261_v34 = vpop.eup %1260 }
 0x348   :  { %v274_v35 = vadd.f32 1.0, %v1261_v34 }
 0x34a   :  { %1262 = vrcp.f32 %v274_v35 }
 0x354   :  { %v1263_v36 = vpop.eup %1262 }
 0x355   :  { %v277_v37 = vmul.f32 2.0, %v1263_v36  ;;  %v283_v42 = vmul.f32 %v1263_v36, %v281_v41 }
 0x357   :  { %v1020_v38 = vadd.f32 -1.0, %v277_v37 }
 0x359   :  { %285 = vrot.lane.b32.xlu1 %v1020_v38, %s1326_s1 }
 0x3cb   :  { %v286_v39 = vpop.permute.xlu1 %285 }
 0x3cc   :  { %v288_v40 = vmul.f32 %v1263_v36, %v286_v39 }
 0x3ce   :  { %290 = vrot.lane.b32.xlu1 %v288_v40, %s1331_s14  ;;  %v153_v40 = vadd.f32 %v1385_v5, %v152_v13  ;;  %v163_v13 = vadd.f32 %v1385_v5, %v1473_v15 }
 0x440   :  { %v291_v43 = vpop.permute.xlu1 %290 }
 0x441   :  { %v293_v44 = vadd.f32 %v291_v43, %v283_v42 }
 0x443   :  { %1264 = vtanh.f32 %v293_v44 }
 0x44d   :  { %v1265_v47 = vpop.eup %1264 }
 0x44e   :  { %296 = vrot.lane.b32.xlu0 %v1265_v47, %s1326_s1 }
 0x4c0   :  { %v297_v48 = vpop.permute.xlu0 %296 }
 0x4c1   :  { %v299_v49 = vmul.f32 %v1263_v36, %v297_v48 }
 0x4c3   :  { %301 = vrot.lane.b32.xlu1 %v299_v49, %s1331_s14 }
 0x535   :  { %v302_v52 = vpop.permute.xlu1 %301 }
 0x536   :  { %1127 = vmatmul.mubr.msk.f32.vlgmr.msra.gmra.mrb[2].mxu1 %vm197_vm2, %v302_v52 }
 0x537   :  { %1219 = vmatpush3.bf16.msra.mxu1 %v1399_v21  ;;  %1148 = vmatprep.mubr.msk.f32.mxu1 %vm1328_vm1, %v1329_v23 }
 0x538   :  { %1220 = vmatprep.subr.bf16.mxu1 %v1327_v20 }
 0x53b   :  { %1222 = vmatpush3.bf16.msra.mxu1 %v1408_v24 }
 0x53c   :  { %1229 = vmatprep.subr.bf16.mxu1 %v1327_v20 }
 0x609   :  { %v371_v54 = vpop.f32.mrb[2].mxu1 }
 0x60a   :  { %v375_v55 = vadd.f32 %v371_v54, %v143_v53  ;;  %v1128_v56 = vpop.f32.mrb[3].mxu1 }
 0x60c   :  { %v1022_v57 = vmul.f32 -1.442695, %v375_v55 }
 0x60e   :  { %1266 = vpow2.f32 %v1022_v57 }
 0x618   :  { %v1267_v58 = vpop.eup %1266 }
 0x619   :  { %v379_v59 = vadd.f32 1.0, %v1267_v58 }
 0x61b   :  { %1268 = vrcp.f32 %v379_v59  ;;  %v158_v59 = vadd.f32 %v1469_v12, %v1385_v5 }
 0x625   :  { %v1269_v60 = vpop.eup %1268 }
 0x626   :  { %v382_v61 = vmul.f32 2.0, %v1269_v60  ;;  %v384_v1 = vmul.f32 %v1269_v60, %v293_v44 }
 0x628   :  { %v1023_v62 = vadd.f32 -1.0, %v382_v61 }
 0x62a   :  { %386 = vrot.lane.b32.xlu0 %v1023_v62, %s1326_s1 }
 0x69c   :  { %v387_v63 = vpop.permute.xlu0 %386 }
 0x69d   :  { %v389_v0 = vmul.f32 %v1269_v60, %v387_v63 }
 0x69f   :  { %391 = vrot.lane.b32.xlu1 %v389_v0, %s1331_s14 }
 0x711   :  { %v392_v2 = vpop.permute.xlu1 %391 }
 0x712   :  { %v394_v3 = vadd.f32 %v392_v2, %v384_v1 }
 0x714   :  { %1270 = vtanh.f32 %v394_v3 }
 0x71e   :  { %v1271_v9 = vpop.eup %1270 }
 0x71f   :  { %397 = vrot.lane.b32.xlu0 %v1271_v9, %s1326_s1 }
 0x791   :  { %v398_v10 = vpop.permute.xlu0 %397 }
 0x792   :  { %v400_v11 = vmul.f32 %v1269_v60, %v398_v10 }
 0x794   :  { %402 = vrot.lane.b32.xlu1 %v400_v11, %s1331_s14 }
 0x806   :  { %v403_v16 = vpop.permute.xlu1 %402 }
 0x807   :  { %1138 = vmatmul.mubr.msk.f32.vlgmr.msra.gmra.mrb[8].mxu0 %vm197_vm2, %v403_v16 }
 0x808   :  { %1225 = vmatpush3.bf16.msra.mxu0 %v1399_v21  ;;  %1159 = vmatprep.mubr.msk.f32.mxu0 %vm1328_vm1, %v1329_v23 }
 0x809   :  { %1226 = vmatprep.subr.bf16.mxu0 %v1327_v20 }
 0x80c   :  { %1228 = vmatpush3.bf16.msra.mxu0 %v1408_v24 }
 0x80d   :  { %1235 = vmatprep.subr.bf16.mxu0 %v1327_v20 }
 0x8da   :  { %v472_v18 = vpop.f32.mrb[8].mxu0 }
 0x8db   :  { %v476_v19 = vadd.f32 %v472_v18, %v148_v17  ;;  %v1139_v22 = vpop.f32.mrb[9].mxu0 }
 0x8dd   :  { %v1025_v25 = vmul.f32 -1.442695, %v476_v19 }
 0x8df   :  { %1272 = vpow2.f32 %v1025_v25 }
 0x8e9   :  { %v1273_v26 = vpop.eup %1272 }
 0x8ea   :  { %v480_v27 = vadd.f32 1.0, %v1273_v26 }
 0x8ec   :  { %1274 = vrcp.f32 %v480_v27 }
 0x8f6   :  { %v1275_v28 = vpop.eup %1274 }
 0x8f7   :  { %v483_v29 = vmul.f32 2.0, %v1275_v28  ;;  %v485_v33 = vmul.f32 %v1275_v28, %v394_v3 }
 0x8f9   :  { %v1026_v30 = vadd.f32 -1.0, %v483_v29 }
 0x8fb   :  { %487 = vrot.lane.b32.xlu0 %v1026_v30, %s1326_s1 }
 0x96d   :  { %v488_v31 = vpop.permute.xlu0 %487 }
 0x96e   :  { %v490_v32 = vmul.f32 %v1275_v28, %v488_v31 }
 0x970   :  { %492 = vrot.lane.b32.xlu1 %v490_v32, %s1331_s14 }
 0x9e2   :  { %v493_v34 = vpop.permute.xlu1 %492 }
 0x9e3   :  { %v495_v35 = vadd.f32 %v493_v34, %v485_v33 }
 0x9e5   :  { %1276 = vtanh.f32 %v495_v35 }
 0x9ef   :  { %v1277_v36 = vpop.eup %1276 }
 0x9f0   :  { %498 = vrot.lane.b32.xlu0 %v1277_v36, %s1326_s1  ;;  %v168_v36 = vadd.f32 %v1471_v14, %v1385_v5  ;;  %v906_v14 = vld [vmem:[%s1560_s4] sm:$0xff] }
 0xa62   :  { %v499_v37 = vpop.permute.xlu0 %498 }
 0xa63   :  { %v501_v38 = vmul.f32 %v1275_v28, %v499_v37 }
 0xa65   :  { %503 = vrot.lane.b32.xlu1 %v501_v38, %s1331_s14 }
 0xad7   :  { %v504_v39 = vpop.permute.xlu1 %503 }
 0xad8   :  { %1149 = vmatmul.mubr.msk.f32.vlgmr.msra.gmra.mrb[4].mxu1 %vm197_vm2, %v504_v39 }
 0xad9   :  { %1231 = vmatpush3.bf16.msra.mxu1 %v1399_v21  ;;  %1170 = vmatprep.mubr.msk.f32.mxu1 %vm1328_vm1, %v1329_v23 }
 0xada   :  { %1232 = vmatprep.subr.bf16.mxu1 %v1327_v20 }
 0xadd   :  { %1234 = vmatpush3.bf16.msra.mxu1 %v1408_v24 }
 0xade   :  { %1241 = vmatprep.subr.bf16.mxu1 %v1327_v20 }
 0xbab   :  { %v573_v41 = vpop.f32.mrb[4].mxu1 }
 0xbac   :  { %v577_v42 = vadd.f32 %v573_v41, %v153_v40  ;;  %v1150_v43 = vpop.f32.mrb[5].mxu1 }
 0xbae   :  { %v1028_v44 = vmul.f32 -1.442695, %v577_v42 }
 0xbb0   :  { %1278 = vpow2.f32 %v1028_v44 }
 0xbba   :  { %v1279_v45 = vpop.eup %1278 }
 0xbbb   :  { %v581_v46 = vadd.f32 1.0, %v1279_v45 }
 0xbbd   :  { %1280 = vrcp.f32 %v581_v46 }
 0xbc7   :  { %v1281_v47 = vpop.eup %1280 }
 0xbc8   :  { %v584_v48 = vmul.f32 2.0, %v1281_v47  ;;  %v586_v52 = vmul.f32 %v1281_v47, %v495_v35 }
 0xbca   :  { %v1029_v49 = vadd.f32 -1.0, %v584_v48 }
 0xbcc   :  { %588 = vrot.lane.b32.xlu0 %v1029_v49, %s1326_s1 }
 0xc3e   :  { %v589_v50 = vpop.permute.xlu0 %588 }
 0xc3f   :  { %v591_v51 = vmul.f32 %v1281_v47, %v589_v50  ;;  %v907_v50 = vld [vmem:[%s1560_s4 + $0x8] sm:$0xff] }
 0xc41   :  { %593 = vrot.lane.b32.xlu1 %v591_v51, %s1331_s14  ;;  %v908_v51 = vld [vmem:[%s1560_s4 + $0x10] sm:$0xff] }
 0xcb3   :  { %v594_v53 = vpop.permute.xlu1 %593 }
 0xcb4   :  { %v596_v54 = vadd.f32 %v594_v53, %v586_v52  ;;  %v1242_v52 = vpack.c.bf16 %v907_v50, %v906_v14  ;;  %v909_v53 = vld [vmem:[%s1560_s4 + $0x18] sm:$0xff]  ;;  %s1332_s4 = smov [#allocation2]  }
 0xcb5   :  { %s999_s11 = sshll.u32 %s1332_s4, 4  ;;  %s1000_s11 = int_to_ptr.vmem [resolvable:$true] %s999_s11 }
 0xcb6   :  { %1282 = vtanh.f32 %v596_v54  ;;  %s1302_s12 = scalar_lea.vmem %s1000_s11, 128  ;;  %p1307_p1 = scmp.lt.s32.totalorder %s1000_s11, %s1000_s11 }
 0xcb7   :  { %p1303_p0 = scmp.ne.s32.totalorder %s1000_s11, %s1302_s12  ;;  %p1308_p2 = scmp.lt.s32.totalorder %s1302_s12, %s1302_s12 }
 0xcb9   :  { %p1309_p3 = por %p1308_p2, %p1307_p1 }
 0xcbb   :  { %p1310_p4 = pnand %p1309_p3, %p1303_p0 }
 0xcc0   :  { %v1283_v55 = vpop.eup %1282 }
 0xcc1   :  { %599 = vrot.lane.b32.xlu0 %v1283_v55, %s1326_s1 }
 0xd33   :  { %v600_v56 = vpop.permute.xlu0 %599 }
 0xd34   :  { %v602_v57 = vmul.f32 %v1281_v47, %v600_v56 }
 0xd36   :  { %604 = vrot.lane.b32.xlu1 %v602_v57, %s1331_s14 }
 0xda8   :  { %v605_v58 = vpop.permute.xlu1 %604 }
 0xda9   :  { %1160 = vmatmul.mubr.msk.f32.vlgmr.msra.gmra.mrb[10].mxu0 %vm197_vm2, %v605_v58 }
 0xdaa   :  { %1237 = vmatpush3.bf16.msra.mxu0 %v1399_v21  ;;  %1181 = vmatprep.mubr.msk.f32.mxu0 %vm1328_vm1, %v1329_v23 }
 0xdab   :  { %1238 = vmatprep.subr.bf16.mxu0 %v1327_v20 }
 0xdae   :  { %1240 = vmatpush3.bf16.msra.mxu0 %v1408_v24 }
 0xe7c   :  { %v674_v60 = vpop.f32.mrb[10].mxu0 }
 0xe7d   :  { %v678_v61 = vadd.f32 %v674_v60, %v158_v59  ;;  %v1161_v62 = vpop.f32.mrb[11].mxu0  ;;  %v1039_v59 = vld [vmem:[%s1561_s5] ss:$0 sm:$0xff] }
 0xe7f   :  { %v1031_v63 = vmul.f32 -1.442695, %v678_v61 }
 0xe81   :  { %1284 = vpow2.f32 %v1031_v63 }
 0xe8b   :  { %v1285_v0 = vpop.eup %1284 }
 0xe8c   :  { %v682_v1 = vadd.f32 1.0, %v1285_v0 }
 0xe8e   :  { %1286 = vrcp.f32 %v682_v1 }
 0xe98   :  { %v1287_v2 = vpop.eup %1286 }
 0xe99   :  { %v685_v21 = vmul.f32 2.0, %v1287_v2  ;;  %v687_v24 = vmul.f32 %v1287_v2, %v596_v54  ;;  %v1245_v54 = vpack.c.bf16 %v909_v53, %v908_v51 }
 0xe9b   :  { %v1032_v3 = vadd.f32 -1.0, %v685_v21 }
 0xe9d   :  { %689 = vrot.lane.b32.xlu0 %v1032_v3, %s1326_s1 }
 0xf0f   :  { %v690_v4 = vpop.permute.xlu0 %689 }
 0xf10   :  { %v692_v6 = vmul.f32 %v1287_v2, %v690_v4 }
 0xf12   :  { %694 = vrot.lane.b32.xlu1 %v692_v6, %s1331_s14 }
 0xf84   :  { %v695_v7 = vpop.permute.xlu1 %694 }
 0xf85   :  { %v697_v8 = vadd.f32 %v695_v7, %v687_v24 }
 0xf87   :  { %1288 = vtanh.f32 %v697_v8 }
 0xf91   :  { %v1289_v9 = vpop.eup %1288 }
 0xf92   :  { %700 = vrot.lane.b32.xlu0 %v1289_v9, %s1326_s1 }
0x1004   :  { %v701_v10 = vpop.permute.xlu0 %700 }
0x1005   :  { %v703_v11 = vmul.f32 %v1287_v2, %v701_v10 }
0x1007   :  { %705 = vrot.lane.b32.xlu1 %v703_v11, %s1331_s14 }
0x1079   :  { %v706_v12 = vpop.permute.xlu1 %705 }
0x107a   :  { %1171 = vmatmul.mubr.msk.f32.vlgmr.msra.gmra.mrb[6].mxu1 %vm197_vm2, %v706_v12 }
0x107b   :  { %1192 = vmatprep.mubr.msk.f32.mxu1 %vm1328_vm1, %v1329_v23  ;;  %1243 = vmatpush3.bf16.msra.mxu1 %v1242_v52 }
0x107c   :  { %1244 = vmatprep.subr.bf16.mxu1 %v1327_v20 }
0x107f   :  { %1246 = vmatpush3.bf16.msra.mxu1 %v1245_v54 }
0x114d   :  { %v775_v16 = vpop.f32.mrb[6].mxu1 }
0x114e   :  { %v779_v17 = vadd.f32 %v775_v16, %v163_v13  ;;  %v1172_v18 = vpop.f32.mrb[7].mxu1 }
0x1150   :  { %v1034_v19 = vmul.f32 -1.442695, %v779_v17 }
0x1152   :  { %1290 = vpow2.f32 %v1034_v19 }
0x115c   :  { %v1291_v22 = vpop.eup %1290 }
0x115d   :  { %v783_v25 = vadd.f32 1.0, %v1291_v22 }
0x115f   :  { %1292 = vrcp.f32 %v783_v25 }
0x1169   :  { %v1293_v26 = vpop.eup %1292 }
0x116a   :  { %v786_v27 = vmul.f32 2.0, %v1293_v26  ;;  %v788_v23 = vmul.f32 %v1293_v26, %v697_v8 }
0x116c   :  { %v1035_v28 = vadd.f32 -1.0, %v786_v27 }
0x116e   :  { %790 = vrot.lane.b32.xlu0 %v1035_v28, %s1326_s1 }
0x11e0   :  { %v791_v29 = vpop.permute.xlu0 %790 }
0x11e1   :  { %v793_v30 = vmul.f32 %v1293_v26, %v791_v29 }
0x11e3   :  { %795 = vrot.lane.b32.xlu1 %v793_v30, %s1331_s14 }
0x1255   :  { %v796_v31 = vpop.permute.xlu1 %795 }
0x1256   :  { %v798_v15 = vadd.f32 %v796_v31, %v788_v23 }
0x1258   :  { %1294 = vtanh.f32 %v798_v15 }
0x1262   :  { %v1295_v32 = vpop.eup %1294 }
0x1263   :  { %801 = vrot.lane.b32.xlu0 %v1295_v32, %s1326_s1 }
0x12d5   :  { %v802_v33 = vpop.permute.xlu0 %801 }
0x12d6   :  { %v804_v34 = vmul.f32 %v1293_v26, %v802_v33 }
0x12d8   :  { %806 = vrot.lane.b32.xlu1 %v804_v34, %s1331_s14 }
0x134a   :  { %v807_v35 = vpop.permute.xlu1 %806 }
0x134b   :  { %1182 = vmatmul.mubr.msk.f32.vlgmr.msra.gmra.mrb[12].mxu0 %vm197_vm2, %v807_v35 }
0x141e   :  { %v876_v37 = vpop.f32.mrb[12].mxu0 }
0x141f   :  { %v880_v38 = vadd.f32 %v876_v37, %v168_v36  ;;  %v1183_v39 = vpop.f32.mrb[13].mxu0 }
0x1421   :  { %v1037_v40 = vmul.f32 -1.442695, %v880_v38 }
0x1423   :  { %1296 = vpow2.f32 %v1037_v40 }
0x142d   :  { %v1297_v41 = vpop.eup %1296 }
0x142e   :  { %v884_v42 = vadd.f32 1.0, %v1297_v41 }
0x1430   :  { %1298 = vrcp.f32 %v884_v42 }
0x143a   :  { %v1299_v43 = vpop.eup %1298 }
0x143b   :  { %v887_v44 = vmul.f32 2.0, %v1299_v43  ;;  %v889_v48 = vmul.f32 %v1299_v43, %v798_v15 }
0x143d   :  { %v1038_v45 = vadd.f32 -1.0, %v887_v44 }
0x143f   :  { %891 = vrot.lane.b32.xlu0 %v1038_v45, %s1326_s1 }
0x14b1   :  { %v892_v46 = vpop.permute.xlu0 %891 }
0x14b2   :  { %v894_v47 = vmul.f32 %v1299_v43, %v892_v46 }
0x14b4   :  { %896 = vrot.lane.b32.xlu1 %v894_v47, %s1331_s14 }
0x1526   :  { %v897_v49 = vpop.permute.xlu1 %896 }
0x1527   :  { %v899_v5 = vadd.f32 %v897_v49, %v889_v48 }
0x1529   :  { %1300 = vtanh.f32 %v899_v5 }
0x1533   :  { %v1301_v55 = vpop.eup %1300 }
0x1534   :  { %902 = vrot.lane.b32.xlu0 %v1301_v55, %s1326_s1 }
0x15a6   :  { %v903_v56 = vpop.permute.xlu0 %902 }
0x15a7   :  { %v905_v57 = vmul.f32 %v1299_v43, %v903_v56 }
0x15a9   :  { %918 = vrot.lane.b32.xlu1 %v905_v57, %s1331_s14 }
0x161b   :  { %v919_v58 = vpop.permute.xlu1 %918 }
0x161c   :  { %1193 = vmatmul.mubr.msk.f32.vlgmr.msra.gmra.mrb[8].mxu1 %vm197_vm2, %v919_v58 }
0x16ef   :  { %v988_v60 = vpop.f32.mrb[8].mxu1 }
0x16f0   :  { %v989_v61 = vadd.f32 %v1039_v59, %v988_v60  ;;  %v1194_v20 = vpop.f32.mrb[9].mxu1 }
0x16f2   :  { %992 = vst [vmem:[#allocation2] sm:$0xff] %v989_v61 }
0x16f3   :  { %1313 = shalt.err (!%p1310_p4)
}
0x16f4   :  { %s1314_s2 = scalar_lea.hbm %s1562_s6, 128 }
0x16f5   :  { %p1315_p5 = scmp.ne.s32.totalorder %s1562_s6, %s1314_s2  ;;  %p1318_p6 = scmp.lt.u32.totalorder %s1314_s2, %s1562_s6 }
0x16f7   :  { %p1320_p7 = pnand %p1318_p6, %p1315_p5 }
0x16f9   :  { %1323 = shalt.err (!%p1320_p7)
}
0x16fa   :  { %1002 = dma.vmem_to_hbm [thread:$0]  %s1000_s11, 128, %s1562_s6, [#allocation3]  }
0x16fb   :  { %1324 = dma.done.wait [#allocation3], 128  }
0x16fc   :  { %1325 = vsyncadd [#allocation3], 4294967168 }
0x16fd   :  { %1006 = vsyncpa [#allocation3], 1 }

</bundles_post_ra>
